<compile_context>
chip_gen: v7x
topology: tpu7x:2x2x1
jax: 0.10.0
libtpu: 0.0.40
codegen_flags: <defaults>
</compile_context>

<pallas_src>
import functools

import jax
import jax.numpy as jnp
from jax import lax
from jax.experimental import pallas as pl
from jax.experimental.pallas import tpu as pltpu

_EPS = 1e-12      # matches torch.nn.functional.normalize default eps
_NEG = -1e30      # finite stand-in for -inf in the online-max fallback path


def _round_up(x, m):
    return (x + m - 1) // m * m


# ----------------------------------------------------------------------------
# Prologue: L2-normalize A and B once, fold 1/temperature into A, emit the
# per-row diagonal term, and (when rows are padded) write two flag lanes that
# make every padded row/column of the similarity matrix hugely negative, so
# the main kernel needs no masking at all.
# ----------------------------------------------------------------------------
def _normalize_kernel(a_ref, b_ref, an_ref, bn_ref, diag_ref, *,
                      inv_temp, n_valid, tile, add_flags, lane_a, lane_b, big):
    a = a_ref[...].astype(jnp.float32)                            # (T, Dp)
    b = b_ref[...].astype(jnp.float32)
    a_scale = lax.rsqrt(jnp.maximum(jnp.sum(a * a, axis=1, keepdims=True),
                                    _EPS * _EPS)) * inv_temp
    b_scale = lax.rsqrt(jnp.maximum(jnp.sum(b * b, axis=1, keepdims=True),
                                    _EPS * _EPS))
    a_n = a * a_scale                                             # rows: norm 1/temp
    b_n = b * b_scale                                             # rows: norm 1

    # Exact (f32) diagonal contribution: sim[i, i] = <a_n[i], b_n[i]>.
    # Padded input rows are all-zero, so their contribution is exactly 0.
    diag_ref[...] = jnp.sum(a_n * b_n, axis=1, keepdims=True)

    if add_flags:
        # Masking by construction:
        #   lane_a:  a[i] = -big if row i padded else 0,  b[j] = 1
        #   lane_b:  a[i] = 1,                            b[j] = -big if padded
        # so sim[i, j] += -big whenever either index is padding; exp of it
        # underflows to exactly 0 in the main kernel.
        dp = a_n.shape[1]
        lane = lax.broadcasted_iota(jnp.int32, (1, dp), 1)
        row = (pl.program_id(0) * tile
               + lax.broadcasted_iota(jnp.int32, (tile, 1), 0))
        is_pad = (row >= n_valid).astype(jnp.float32)             # (T, 1)
        a_n = jnp.where(lane == lane_a, -big * is_pad, a_n)
        a_n = jnp.where(lane == lane_b, 1.0, a_n)
        b_n = jnp.where(lane == lane_a, 1.0, b_n)
        b_n = jnp.where(lane == lane_b, -big * is_pad, b_n)

    an_ref[...] = a_n.astype(an_ref.dtype)
    bn_ref[...] = b_n.astype(bn_ref.dtype)


# ----------------------------------------------------------------------------
# Main kernel: one (query_tile, key_tile) step of the bidirectional softmax.
# Inputs are already normalized (1/temperature folded into A) and in mm_dtype.
# ----------------------------------------------------------------------------
def _infonce_kernel(a_ref, b_ref, col_ref, row_ref, l_r, m_r, *,
                    inv_temp, fixed_shift):
    ki = pl.program_id(1)
    nk = pl.num_programs(1)

    # sim[i, j] = <a_n[qi*T + i], b_n[ki*T + j]>; contraction on dim 1 of both
    # operands (no B transpose materialized); f32 accumulation on the MXU.
    sim = lax.dot_general(a_ref[...], b_ref[...],
                          dimension_numbers=(((1,), (1,)), ((), ())),
                          preferred_element_type=jnp.float32)     # (T, T)
    tq, tk = sim.shape

    if fixed_shift:
        # |sim| <= 1/temperature for unit-norm rows, so a fixed shift replaces
        # the running max: one exp, two sums, no rescale factors, no m-state.
        @pl.when(ki == 0)
        def _():
            l_r[...] = jnp.zeros_like(l_r)

        p = jnp.exp(sim - inv_temp)                               # only (T,T) exp
        l_r[...] += jnp.sum(p, axis=1, keepdims=True)
        col_ref[...] = jnp.sum(p, axis=0, keepdims=True).reshape(1, 1, 1, tk)

        @pl.when(ki == nk - 1)
        def _():
            row_ref[...] = (inv_temp + jnp.log(l_r[...])).reshape(1, tq, 1)
    else:
        # Extreme-temperature fallback: online row logsumexp plus an exact
        # per-tile column logsumexp (combined across query tiles in JAX).
        @pl.when(ki == 0)
        def _():
            m_r[...] = jnp.full_like(m_r, _NEG)
            l_r[...] = jnp.zeros_like(l_r)

        m_new = jnp.maximum(m_r[...], jnp.max(sim, axis=1, keepdims=True))
        l_r[...] = (l_r[...] * jnp.exp(m_r[...] - m_new)
                    + jnp.sum(jnp.exp(sim - m_new), axis=1, keepdims=True))
        m_r[...] = m_new

        m_c = jnp.max(sim, axis=0, keepdims=True)                 # (1, T)
        l_c = jnp.sum(jnp.exp(sim - m_c), axis=0, keepdims=True)
        col_ref[...] = (m_c + jnp.log(l_c)).reshape(1, 1, 1, tk)

        @pl.when(ki == nk - 1)
        def _():
            row_ref[...] = (m_r[...] + jnp.log(l_r[...])).reshape(1, tq, 1)


def infonce_loss(A, B, temperature=0.07, *, tile=512, mm_dtype=jnp.bfloat16):
    """InfoNCE loss between A (N, D) and B (N, D); returns a scalar f32."""
    assert A.ndim == 2 and A.shape == B.shape
    N, D = A.shape
    inv_temp = 1.0 / float(temperature)
    # Fixed-shift LSE is safe when an all-minimum row cannot underflow to 0
    # (exp(-2/temperature) must stay > 0 in f32).
    fixed_shift = (2.0 * inv_temp) <= 80.0
    big = float(inv_temp + 1024.0)

    mm_dtype = jnp.dtype(mm_dtype)
    in_bytes = jnp.dtype(A.dtype).itemsize
    mm_bytes = mm_dtype.itemsize

    # --- per-generation VMEM budget (v7x: 64 MiB/TC; v5e/v6e: 128 MiB) ------
    try:
        vmem_cap = int(pltpu.get_tpu_info().vmem_capacity_bytes)
        if vmem_cap < (32 << 20):
            vmem_cap = 64 << 20
    except Exception:
        vmem_cap = 64 << 20                       # conservative: valid everywhere
    vmem_limit = min(int(vmem_cap * 0.7), 100 << 20)
    tile_budget = vmem_limit - (4 << 20)

    Dp0 = _round_up(max(D, 1), 128)

    def _footprint(t):
        return (2 * 2 * t * Dp0 * mm_bytes        # A_n, B_n tiles, double-buffered
                + 4 * t * t * 4                   # (T,T) sim / exp intermediates
                + 2 * t * 128 * 4                 # l_r / m_r scratch (lane padded)
                + 4 * t * 4)                      # per-step output blocks

    T = min(_round_up(N, 8), max(8, _round_up(tile, 8)))
    while T > 128 and _footprint(T) > tile_budget:
        T = _round_up(T // 2, 8)

    Np = _round_up(N, T)
    need_pad = Np != N
    # Reserve two flag lanes for padded-row masking when needed.
    Dp = Dp0 if (not need_pad or Dp0 - D >= 2) else Dp0 + 128
    lane_a, lane_b = D, D + 1
    nq = nk = Np // T

    if (Np, Dp) != (N, D):
        A = jnp.pad(A, ((0, Np - N), (0, Dp - D)))
        B = jnp.pad(B, ((0, Np - N), (0, Dp - D)))

    # ---------------- prologue: normalize once, write mm_dtype --------------
    norm_kernel = functools.partial(
        _normalize_kernel, inv_temp=inv_temp, n_valid=N, tile=T,
        add_flags=need_pad, lane_a=lane_a, lane_b=lane_b, big=big)
    a_n, b_n, rowdot = pl.pallas_call(
        norm_kernel,
        out_shape=(jax.ShapeDtypeStruct((Np, Dp), mm_dtype),
                   jax.ShapeDtypeStruct((Np, Dp), mm_dtype),
                   jax.ShapeDtypeStruct((Np, 1), jnp.float32)),
        grid_spec=pltpu.PrefetchScalarGridSpec(
            num_scalar_prefetch=0, grid=(nq,),
            in_specs=[pl.BlockSpec((T, Dp), lambda i: (i, 0)),
                      pl.BlockSpec((T, Dp), lambda i: (i, 0))],
            out_specs=[pl.BlockSpec((T, Dp), lambda i: (i, 0)),
                       pl.BlockSpec((T, Dp), lambda i: (i, 0)),
                       pl.BlockSpec((T, 1), lambda i: (i, 0))]),
        compiler_params=pltpu.CompilerParams(
            dimension_semantics=("parallel",),
            vmem_limit_bytes=vmem_limit),
        cost_estimate=pl.CostEstimate(
            flops=8 * Np * Dp, transcendentals=2 * Np,
            bytes_accessed=2 * Np * Dp * (in_bytes + mm_bytes) + 4 * Np),
    )(A, B)

    # -------- main: flash-style bidirectional logsumexp over (nq, nk) -------
    main_kernel = functools.partial(
        _infonce_kernel, inv_temp=inv_temp, fixed_shift=fixed_shift)
    col_part, row_lse = pl.pallas_call(
        main_kernel,
        out_shape=(jax.ShapeDtypeStruct((nq, nk, 1, T), jnp.float32),
                   jax.ShapeDtypeStruct((nq, T, 1), jnp.float32)),
        grid_spec=pltpu.PrefetchScalarGridSpec(
            num_scalar_prefetch=0,
            grid=(nq, nk),                        # key (reduction) axis innermost
            in_specs=[pl.BlockSpec((T, Dp), lambda qi, ki: (qi, 0)),   # A_n tile
                      pl.BlockSpec((T, Dp), lambda qi, ki: (ki, 0))],  # B_n tile
            out_specs=[
                pl.BlockSpec((1, 1, 1, T), lambda qi, ki: (qi, ki, 0, 0)),
                pl.BlockSpec((1, T, 1), lambda qi, ki: (qi, 0, 0))],
            scratch_shapes=[pltpu.VMEM((T, 1), jnp.float32),   # l_r
                            pltpu.VMEM((T, 1), jnp.float32)]), # m_r (fallback only)
        compiler_params=pltpu.CompilerParams(
            # Query tiles are fully independent -> megacore-shardable on v7x.
            dimension_semantics=("parallel", "arbitrary"),
            vmem_limit_bytes=vmem_limit),
        cost_estimate=pl.CostEstimate(
            flops=2 * Np * Np * Dp,
            transcendentals=Np * Np + 4 * Np,
            bytes_accessed=(1 + nq) * Np * Dp * mm_bytes + (nq + 1) * Np * 4),
    )(a_n, b_n)

    # ---------------- tiny O(N) combine in plain JAX ------------------------
    valid = jnp.arange(Np) < N
    row_lse = row_lse.reshape(Np)
    col_part = col_part.reshape(nq, Np)
    if fixed_shift:
        col_lse = inv_temp + jnp.log(jnp.sum(col_part, axis=0))
    else:
        col_lse = jax.scipy.special.logsumexp(col_part, axis=0)
    row_sum = jnp.sum(jnp.where(valid, row_lse, 0.0))
    col_sum = jnp.sum(jnp.where(valid, col_lse, 0.0))
    diag_sum = jnp.sum(rowdot)            # padded rows contribute exactly 0
    return (row_sum + col_sum - 2.0 * diag_sum) / (2.0 * N)


def _infonce_ref(A, B, temperature=0.07):
    # Pure-JAX reference mirroring the PyTorch module.
    A_n = A / jnp.maximum(jnp.linalg.norm(A, axis=1, keepdims=True), 1e-12)
    B_n = B / jnp.maximum(jnp.linalg.norm(B, axis=1, keepdims=True), 1e-12)
    sim = (A_n @ B_n.T) / temperature
    labels = jnp.arange(A.shape[0])

    def ce(logits):
        lse = jax.scipy.special.logsumexp(logits, axis=1)
        return jnp.mean(lse - logits[jnp.arange(logits.shape[0]), labels])

    return 0.5 * (ce(sim) + ce(sim.T))


if __name__ == "__main__":
    k0 = jax.random.PRNGKey(0)
    kA, kB, kC, kD, kE, kF = jax.random.split(k0, 6)

    # Small shapes implied by the module: batch=8 embeddings of hidden=32.
    N, D = 8, 32
    A = jax.random.normal(kA, (N, D), dtype=jnp.float32)
    B = jax.random.normal(kB, (N, D), dtype=jnp.float32)
    ref = _infonce_ref(A, B, temperature=0.07)

    # f32-MXU path: matches the f32 reference tightly.
    loss_f32 = infonce_loss(A, B, temperature=0.07, mm_dtype=jnp.float32)
    jax.block_until_ready(loss_f32)
    assert jnp.allclose(loss_f32, ref, rtol=5e-4, atol=1e-4), (loss_f32, ref)

    # Default bf16-MXU path (recommended for speed): looser tolerance.
    loss_bf16 = infonce_loss(A, B, temperature=0.07)
    jax.block_until_ready(loss_bf16)
    assert jnp.allclose(loss_bf16, ref, rtol=5e-2, atol=5e-2), (loss_bf16, ref)

    # Multi-tile grid with row padding (flag-lane masking) + D padding.
    N2, D2 = 40, 96
    A2 = jax.random.normal(kC, (N2, D2), dtype=jnp.float32)
    B2 = jax.random.normal(kD, (N2, D2), dtype=jnp.float32)
    ref2 = _infonce_ref(A2, B2, temperature=0.07)
    loss2 = infonce_loss(A2, B2, temperature=0.07, tile=16, mm_dtype=jnp.float32)
    jax.block_until_ready(loss2)
    assert jnp.allclose(loss2, ref2, rtol=5e-4, atol=1e-4), (loss2, ref2)
    loss2b = infonce_loss(A2, B2, temperature=0.07, tile=16)
    jax.block_until_ready(loss2b)
    assert jnp.allclose(loss2b, ref2, rtol=5e-2, atol=5e-2), (loss2b, ref2)

    # Extreme temperature exercises the online-max fallback path.
    N3, D3 = 20, 64
    A3 = jax.random.normal(kE, (N3, D3), dtype=jnp.float32)
    B3 = jax.random.normal(kF, (N3, D3), dtype=jnp.float32)
    ref3 = _infonce_ref(A3, B3, temperature=0.005)
    loss3 = infonce_loss(A3, B3, temperature=0.005, tile=8, mm_dtype=jnp.float32)
    jax.block_until_ready(loss3)
    assert jnp.allclose(loss3, ref3, rtol=2e-3, atol=1e-2), (loss3, ref3)

    print("KERNEL_OK")
</pallas_src>

<mosaic_0001>
module attributes {stable_mosaic.version = 11 : i64} {
  func.func @_normalize_kernel(%arg0: i32, %arg1: memref<8x128xf32, #tpu.memory_space<vmem>>, %arg2: memref<8x128xf32, #tpu.memory_space<vmem>>, %arg3: memref<8x128xf32, #tpu.memory_space<vmem>>, %arg4: memref<8x128xf32, #tpu.memory_space<vmem>>, %arg5: memref<8x1xf32, #tpu.memory_space<vmem>>) attributes {dimension_semantics = [#tpu.dimension_semantics<parallel>], iteration_bounds = array<i64: 1>, scalar_prefetch = 0 : i64, scratch_operands = 0 : i64, tpu.core_type = #tpu.core_type<tc>, window_params = [{transform_indices = @transform_0, window_bounds = array<i64: 8, 128>}, {transform_indices = @transform_1, window_bounds = array<i64: 8, 128>}, {transform_indices = @transform_2, window_bounds = array<i64: 8, 128>}, {transform_indices = @transform_3, window_bounds = array<i64: 8, 128>}, {transform_indices = @transform_4, window_bounds = array<i64: 8, 1>}]} {
    %c0 = arith.constant 0 : index
    %c0_0 = arith.constant 0 : index
    %0 = vector.load %arg1[%c0, %c0_0] : memref<8x128xf32, #tpu.memory_space<vmem>>, vector<8x128xf32>
    %c0_1 = arith.constant 0 : index
    %c0_2 = arith.constant 0 : index
    %1 = vector.load %arg2[%c0_1, %c0_2] : memref<8x128xf32, #tpu.memory_space<vmem>>, vector<8x128xf32>
    %2 = arith.mulf %0, %0 : vector<8x128xf32>
    %cst = arith.constant dense<0.000000e+00> : vector<8xf32>
    %3 = vector.multi_reduction <add>, %2, %cst [1] : vector<8x128xf32> to vector<8xf32>
    %4 = vector.shape_cast %3 : vector<8xf32> to vector<8x1xf32>
    %cst_3 = arith.constant 1.000000e-24 : f32
    %5 = vector.broadcast %cst_3 : f32 to vector<8x1xf32>
    %6 = arith.maximumf %4, %5 : vector<8x1xf32>
    %7 = math.rsqrt %6 : vector<8x1xf32>
    %cst_4 = arith.constant 14.2857141 : f32
    %8 = vector.broadcast %cst_4 : f32 to vector<8x1xf32>
    %9 = arith.mulf %7, %8 : vector<8x1xf32>
    %10 = arith.mulf %1, %1 : vector<8x128xf32>
    %cst_5 = arith.constant dense<0.000000e+00> : vector<8xf32>
    %11 = vector.multi_reduction <add>, %10, %cst_5 [1] : vector<8x128xf32> to vector<8xf32>
    %12 = vector.shape_cast %11 : vector<8xf32> to vector<8x1xf32>
    %cst_6 = arith.constant 1.000000e-24 : f32
    %13 = vector.broadcast %cst_6 : f32 to vector<8x1xf32>
    %14 = arith.maximumf %12, %13 : vector<8x1xf32>
    %15 = math.rsqrt %14 : vector<8x1xf32>
    %16 = vector.broadcast %9 : vector<8x1xf32> to vector<8x128xf32>
    %17 = arith.mulf %0, %16 : vector<8x128xf32>
    %18 = vector.broadcast %15 : vector<8x1xf32> to vector<8x128xf32>
    %19 = arith.mulf %1, %18 : vector<8x128xf32>
    %20 = arith.mulf %17, %19 : vector<8x128xf32>
    %cst_7 = arith.constant dense<0.000000e+00> : vector<8xf32>
    %21 = vector.multi_reduction <add>, %20, %cst_7 [1] : vector<8x128xf32> to vector<8xf32>
    %22 = vector.shape_cast %21 : vector<8xf32> to vector<8x1xf32>
    %c0_8 = arith.constant 0 : index
    %c0_9 = arith.constant 0 : index
    %23 = vector.load %arg5[%c0_8, %c0_9] : memref<8x1xf32, #tpu.memory_space<vmem>>, vector<8x1xf32>
    tpu.vector_store %arg5[%c0_8, %c0_9], %22 {strides = array<i32>} : memref<8x1xf32, #tpu.memory_space<vmem>>, vector<8x1xf32>,
    %c0_10 = arith.constant 0 : index
    %c0_11 = arith.constant 0 : index
    %24 = vector.load %arg3[%c0_10, %c0_11] : memref<8x128xf32, #tpu.memory_space<vmem>>, vector<8x128xf32>
    tpu.vector_store %arg3[%c0_10, %c0_11], %17 {strides = array<i32>} : memref<8x128xf32, #tpu.memory_space<vmem>>, vector<8x128xf32>,
    %c0_12 = arith.constant 0 : index
    %c0_13 = arith.constant 0 : index
    %25 = vector.load %arg4[%c0_12, %c0_13] : memref<8x128xf32, #tpu.memory_space<vmem>>, vector<8x128xf32>
    tpu.vector_store %arg4[%c0_12, %c0_13], %19 {strides = array<i32>} : memref<8x128xf32, #tpu.memory_space<vmem>>, vector<8x128xf32>,
    return
  }
  func.func @transform_0(%arg0: i32) -> (i32, i32) {
    %c0_i32 = arith.constant 0 : i32
    %c0_i32_0 = arith.constant 0 : i32
    return %arg0, %c0_i32 : i32, i32
  }
  func.func @transform_1(%arg0: i32) -> (i32, i32) {
    %c0_i32 = arith.constant 0 : i32
    %c0_i32_0 = arith.constant 0 : i32
    return %arg0, %c0_i32 : i32, i32
  }
  func.func @transform_2(%arg0: i32) -> (i32, i32) {
    %c0_i32 = arith.constant 0 : i32
    %c0_i32_0 = arith.constant 0 : i32
    return %arg0, %c0_i32 : i32, i32
  }
  func.func @transform_3(%arg0: i32) -> (i32, i32) {
    %c0_i32 = arith.constant 0 : i32
    %c0_i32_0 = arith.constant 0 : i32
    return %arg0, %c0_i32 : i32, i32
  }
  func.func @transform_4(%arg0: i32) -> (i32, i32) {
    %c0_i32 = arith.constant 0 : i32
    %c0_i32_0 = arith.constant 0 : i32
    return %arg0, %c0_i32 : i32, i32
  }
}

</mosaic_0001>

<bundles_post_ra>
// kernel: tpu_custom_call.1
= control target key start
LH: loop header
LB: loop body
LE: loop exit
PB: predicated region body
PF: predicated region fallthrough
CT: control target
= control target key end

     0   :  { %10 = vsyncpa [#allocation3], 0  ;;  %s280_s0 = inlined_call_operand.hbm [shape: f32[8,128], index: 0, kind: input, shape index: {}]   ;;  %s281_s1 = inlined_call_operand.hbm [shape: f32[8,128], index: 1, kind: input, shape index: {}]   ;;  %s282_s2 = inlined_call_operand.hbm [shape: f32[8,128], index: 2, kind: output, shape index: {0}]   ;;  %s283_s3 = inlined_call_operand.hbm [shape: f32[8,128], index: 3, kind: output, shape index: {1}]   ;;  %s284_s4 = inlined_call_operand.vmem [shape: f32[8,1], index: 4, kind: output, shape index: {2}]  }
   0x1   :  { %11 = vsyncpa [#allocation6], 0 }
   0x2   :  { %12 = vsyncpa [#allocation4], 0 }
   0x3   :  { %13 = vsyncpa [#allocation9], 0  ;;  %s200_s15 = smov [#allocation2]   ;;  %s201_s17 = smov [#allocation5]  }
   0x4   :  { %s20_s16 = sshll.u32 %s200_s15, 4  ;;  %s30_s18 = sshll.u32 %s201_s17, 4  ;;  %s21_s16 = int_to_ptr.vmem [resolvable:$true] %s20_s16  ;;  %s31_s18 = int_to_ptr.vmem [resolvable:$true] %s30_s18 }
   0x5   :  { %s104_s21 = scalar_lea.hbm %s280_s0, 128 }
   0x6   :  { %p105_p0 = scmp.ne.s32.totalorder %s280_s0, %s104_s21  ;;  %p108_p1 = scmp.lt.u32.totalorder %s104_s21, %s280_s0 }
   0x8   :  { %p110_p2 = pnand %p108_p1, %p105_p0 }
   0xa   :  { %113 = shalt.err (!%p110_p2)
}
   0xb   :  { %s114_s26 = scalar_lea.vmem %s21_s16, 128  ;;  %p119_p4 = scmp.lt.s32.totalorder %s21_s16, %s21_s16 }
   0xc   :  { %p115_p3 = scmp.ne.s32.totalorder %s21_s16, %s114_s26  ;;  %p120_p5 = scmp.lt.s32.totalorder %s114_s26, %s114_s26 }
   0xe   :  { %p121_p6 = por %p120_p5, %p119_p4 }
  0x10   :  { %p122_p7 = pnand %p121_p6, %p115_p3 }
  0x12   :  { %125 = shalt.err (!%p122_p7)
}
  0x13   :  { %23 = dma.hbm_to_vmem [thread:$0]  %s280_s0, 128, %s21_s16, [#allocation3]  }
  0x14   :  { %s126_s5 = scalar_lea.hbm %s281_s1, 128 }
  0x15   :  { %p127_p8 = scmp.ne.s32.totalorder %s281_s1, %s126_s5  ;;  %p130_p9 = scmp.lt.u32.totalorder %s126_s5, %s281_s1 }
  0x17   :  { %p132_p10 = pnand %p130_p9, %p127_p8 }
  0x19   :  { %135 = shalt.err (!%p132_p10)
}
  0x1a   :  { %s136_s10 = scalar_lea.vmem %s31_s18, 128  ;;  %p141_p12 = scmp.lt.s32.totalorder %s31_s18, %s31_s18 }
  0x1b   :  { %p137_p11 = scmp.ne.s32.totalorder %s31_s18, %s136_s10  ;;  %p142_p13 = scmp.lt.s32.totalorder %s136_s10, %s136_s10 }
  0x1d   :  { %p143_p0 = por %p142_p13, %p141_p12 }
  0x1f   :  { %p144_p1 = pnand %p143_p0, %p137_p11 }
  0x21   :  { %147 = shalt.err (!%p144_p1)
}
  0x22   :  { %33 = dma.hbm_to_vmem [thread:$0]  %s281_s1, 128, %s31_s18, [#allocation6]  }
  0x23   :  { %192 = dma.done.wait [#allocation3], 128  }
  0x24   :  { %193 = vsyncadd [#allocation3], 4294967168 }
  0x25   :  { %194 = dma.done.wait [#allocation6], 128  }
  0x26   :  { %195 = vsyncadd [#allocation6], 4294967168  ;;  %v40_v0 = vld [vmem:[#allocation2] sm:$0xff]  ;;  %v41_v1 = vld [vmem:[#allocation5] sm:$0xff]  ;;  %s202_s1 = smov [#allocation7]   ;;  %s203_s13 = smov [#allocation8]  }
  0x27   :  { %v42_v2 = vmul.f32 %v40_v0, %v40_v0  ;;  %v48_v3 = vmul.f32 %v41_v1, %v41_v1  ;;  %s68_s12 = sshll.u32 %s202_s1, 4  ;;  %s78_s14 = sshll.u32 %s203_s13, 4  ;;  %s69_s12 = int_to_ptr.vmem [resolvable:$true] %s68_s12  ;;  %s79_s14 = int_to_ptr.vmem [resolvable:$true] %s78_s14 }
  0x28   :  { %s148_s15 = scalar_lea.vmem %s69_s12, 128  ;;  %p153_p3 = scmp.lt.s32.totalorder %s69_s12, %s69_s12 }
  0x29   :  { %43 = vadd.xlane.f32.xlu0 %v42_v2  ;;  %p149_p2 = scmp.ne.s32.totalorder %s69_s12, %s148_s15  ;;  %p154_p4 = scmp.lt.s32.totalorder %s148_s15, %s148_s15 }
  0x2b   :  { %p155_p5 = por %p154_p4, %p153_p3 }
  0x2d   :  { %49 = vadd.xlane.f32.xlu0 %v48_v3  ;;  %p156_p6 = pnand %p155_p5, %p149_p2 }
  0xb6   :  { %v44_v4 = vpop.xlane.xlu0 %43 }
  0xb7   :  { %v45_v5 = vmax.f32 %v44_v4, 1e-24 }
  0xb9   :  { %100 = vrsqrt.f32 %v45_v5 }
  0xba   :  { %v50_v6 = vpop.xlane.xlu0 %49 }
  0xbb   :  { %v51_v7 = vmax.f32 %v50_v6, 1e-24 }
  0xbd   :  { %102 = vrsqrt.f32 %v51_v7 }
  0xc3   :  { %v101_v8 = vpop.eup %100 }
  0xc4   :  { %v47_v9 = vmul.f32 14.285714, %v101_v8 }
  0xc6   :  { %v53_v10 = vmul.f32 %v47_v9, %v40_v0 }
  0xc7   :  { %v103_v11 = vpop.eup %102 }
  0xc8   :  { %v54_v12 = vmul.f32 %v103_v11, %v41_v1  ;;  %60 = vst [vmem:[#allocation7] sm:$0xff] %v53_v10 }
  0xca   :  { %v55_v13 = vmul.f32 %v54_v12, %v53_v10  ;;  %61 = vst [vmem:[#allocation8] sm:$0xff] %v54_v12 }
  0xcc   :  { %56 = vadd.xlane.f32.xlu1 %v55_v13 }
  0xcd   :  { %159 = shalt.err (!%p156_p6)
}
  0xce   :  { %s160_s18 = scalar_lea.hbm %s282_s2, 128 }
  0xcf   :  { %p161_p7 = scmp.ne.s32.totalorder %s282_s2, %s160_s18  ;;  %p164_p8 = scmp.lt.u32.totalorder %s160_s18, %s282_s2 }
  0xd1   :  { %p166_p9 = pnand %p164_p8, %p161_p7 }
  0xd3   :  { %169 = shalt.err (!%p166_p9)
}
  0xd4   :  { %71 = dma.vmem_to_hbm [thread:$0]  %s69_s12, 128, %s282_s2, [#allocation4]  }
  0xd5   :  { %s170_s25 = scalar_lea.vmem %s79_s14, 128  ;;  %p175_p11 = scmp.lt.s32.totalorder %s79_s14, %s79_s14 }
  0xd6   :  { %p171_p10 = scmp.ne.s32.totalorder %s79_s14, %s170_s25  ;;  %p176_p12 = scmp.lt.s32.totalorder %s170_s25, %s170_s25 }
  0xd8   :  { %p177_p13 = por %p176_p12, %p175_p11 }
  0xda   :  { %p178_p0 = pnand %p177_p13, %p171_p10 }
  0xdc   :  { %181 = shalt.err (!%p178_p0)
}
  0xdd   :  { %s182_s28 = scalar_lea.hbm %s283_s3, 128 }
  0xde   :  { %p183_p1 = scmp.ne.s32.totalorder %s283_s3, %s182_s28  ;;  %p186_p2 = scmp.lt.u32.totalorder %s182_s28, %s283_s3 }
  0xe0   :  { %p188_p3 = pnand %p186_p2, %p183_p1 }
  0xe2   :  { %191 = shalt.err (!%p188_p3)
}
  0xe3   :  { %81 = dma.vmem_to_hbm [thread:$0]  %s79_s14, 128, %s283_s3, [#allocation9]   ;;  %vm58_vm0 = vcmask 7168  }
 0x159   :  { %v57_v14 = vpop.xlane.xlu1 %56 }
 0x15a   :  { %59 = vst.msk [vmem:[%s284_s4] sm:$0xff] %vm58_vm0, %v57_v14 }
 0x15b   :  { %196 = dma.done.wait [#allocation4], 128  }
 0x15c   :  { %197 = vsyncadd [#allocation4], 4294967168 }
 0x15d   :  { %198 = dma.done.wait [#allocation9], 128  }
 0x15e   :  { %199 = vsyncadd [#allocation9], 4294967168 }
 0x15f   :  { %92 = vsyncpa [#allocation3], 1 }
 0x160   :  { %93 = vsyncpa [#allocation6], 1 }
 0x161   :  { %94 = vsyncpa [#allocation4], 1 }
 0x162   :  { %95 = vsyncpa [#allocation9], 1 }

</bundles_post_ra>
